<compile_context>
chip_gen: v6e
topology: v6e:2x2x1
jax: 0.10.0
libtpu: 0.0.40
codegen_flags: <defaults>
</compile_context>

<pallas_src>
import math

import jax
import jax.numpy as jnp
from jax.experimental import pallas as pl
from jax.experimental.pallas import tpu as pltpu


def _round_up(n: int, m: int) -> int:
    return ((n + m - 1) // m) * m


def _device_info():
    """Best-effort device query: (per-core VMEM bytes, preferred lane alignment)."""
    vmem_bytes = 64 * 1024 * 1024          # conservative default (v7x per-TC VMEM)
    lane_align = 128
    try:
        info = pltpu.get_tpu_info()
        cap = getattr(info, "vmem_capacity_bytes", None)
        if cap:
            vmem_bytes = int(cap)
    except Exception:
        pass
    try:
        kind = jax.devices()[0].device_kind.lower()
        # v6e / v7x have 2x256^2 MXUs -> prefer 256-lane alignment for wide layers.
        if ("v6" in kind) or ("v7" in kind) or ("tpu7" in kind):
            lane_align = 256
    except Exception:
        pass
    return vmem_bytes, lane_align


def make_mlp_kernel(num_layers: int, mlp_type: str, valid_out: int, use_bf16: bool):
    """num_layers = hidden layers + 1 output layer.  ReLU after every layer but the
    last, then softmax / sigmoid / identity depending on mlp_type."""
    mm_dtype = jnp.bfloat16 if use_bf16 else jnp.float32

    def kernel(*refs):
        x_ref = refs[0]
        o_ref = refs[-1]
        param_refs = refs[1:-1]          # alternating (W, b), output layer last

        h = x_ref[...].astype(mm_dtype)

        for i in range(num_layers):
            w = param_refs[2 * i][...].astype(mm_dtype)
            b = param_refs[2 * i + 1][...].astype(jnp.float32)
            # MXU matmul (bf16 operands by default), f32 accumulation; bias-add and
            # ReLU fused in one f32 expression (no separate broadcast temporary).
            h = jnp.dot(h, w, preferred_element_type=jnp.float32) + b
            if i < num_layers - 1:
                h = jnp.maximum(h, 0.0).astype(mm_dtype)   # ReLU on hidden layers only

        logits = h.astype(jnp.float32)   # [TILE_B, out_pad]

        if mlp_type == "cls_multi":
            # Mask zero-padded output lanes so they don't pollute the softmax sum.
            if valid_out < logits.shape[-1]:
                lane = jax.lax.broadcasted_iota(jnp.int32, logits.shape, 1)
                logits = jnp.where(lane < valid_out, logits, -1e30)
            m = jnp.max(logits, axis=1, keepdims=True)
            e = jnp.exp(logits - m)
            # Exact normalization: approx reciprocal broke the row-sum == 1 invariant.
            out = e / jnp.sum(e, axis=1, keepdims=True)
        elif mlp_type == "cls_bin":
            out = 1.0 / (1.0 + jnp.exp(-logits))
        else:  # 'reg'
            out = logits

        o_ref[...] = out.astype(o_ref.dtype)

    return kernel


def init_mlp_params(key, input_size, hidden_sizes, output_size):
    """PyTorch-style Linear init (uniform +-1/sqrt(fan_in)).
    Weights are [in, out]; biases are [1, out] (2-D for TPU layout)."""
    params = []
    dims = [input_size] + list(hidden_sizes) + [output_size]
    for fan_in, fan_out in zip(dims[:-1], dims[1:]):
        key, kw, kb = jax.random.split(key, 3)
        bound = 1.0 / math.sqrt(fan_in)
        w = jax.random.uniform(kw, (fan_in, fan_out), jnp.float32, -bound, bound)
        b = jax.random.uniform(kb, (1, fan_out), jnp.float32, -bound, bound)
        params.append((w, b))
    return params


def _pad_params(params, in_pad, use_bf16, lane_align):
    """Zero-pad every layer's output width to a lane-dense multiple (128, or 256 on
    v6e/v7x for wide layers) and its input width to the previous padded width.  Zero
    pads keep the math exact: padded hidden units are 0 after ReLU."""
    padded = []
    prev = in_pad
    for w, b in params:
        fan_in, fan_out = w.shape
        align = lane_align if fan_out >= 128 else 128
        fan_out_p = _round_up(fan_out, align)
        w_p = jnp.zeros((prev, fan_out_p), jnp.float32).at[:fan_in, :fan_out].set(w)
        b_p = jnp.zeros((1, fan_out_p), jnp.float32).at[:, :fan_out].set(b)
        if use_bf16:
            w_p = w_p.astype(jnp.bfloat16)   # halves resident-weight VMEM + DMA
        padded.append((w_p, b_p))
        prev = fan_out_p
    return padded


def _choose_tile_b(batch, in_pad, padded_params, budget_bytes, weight_buffers):
    param_bytes = weight_buffers * sum(
        w.size * w.dtype.itemsize + b.size * b.dtype.itemsize for w, b in padded_params)
    if param_bytes > budget_bytes:
        # TODO(synk): add a streamed-weights path (pltpu.emit_pipeline over weight
        # chunks) for MLPs whose parameters exceed the resident-weight VMEM budget.
        raise NotImplementedError(
            f"MLP parameters ({param_bytes} B with {weight_buffers} buffer(s)) exceed "
            f"the VMEM budget ({budget_bytes} B); streamed-weights path not implemented.")

    widths = [in_pad] + [w.shape[1] for w, _ in padded_params]
    max_w = max(widths)
    out_pad = widths[-1]

    b_target = _round_up(batch, 8)
    # Keep >=2 grid steps when the batch allows it so the "parallel" batch axis can
    # land on both v7x TensorCores (costs nothing on single-TC chips).
    cap = max(8, b_target // 2) if b_target >= 16 else b_target

    def act_bytes(tb):
        # Double-buffered f32 x / out tiles + widest f32 activation (+ bf16 copies).
        return 4 * tb * (2 * in_pad + 2 * out_pad) + 6 * tb * max_w

    tile_b = 8
    for cand in (2048, 1024, 512, 256, 128, 64, 32, 16, 8):
        if cand > cap:
            continue
        if param_bytes + act_bytes(cand) <= budget_bytes:
            tile_b = cand
            break
    return tile_b, param_bytes + act_bytes(tile_b)


def _mlp_pallas_call(x, params, mlp_type, use_bf16, single_buffer_weights,
                     vmem_capacity, lane_align):
    batch, input_size = x.shape
    out_features = params[-1][0].shape[1]
    num_layers = len(params)

    in_pad = _round_up(input_size, 128)            # lane-dense K for the first matmul
    padded_params = _pad_params(params, in_pad, use_bf16, lane_align)
    out_pad = padded_params[-1][0].shape[1]

    budget = int(vmem_capacity * 0.70)             # generation-aware VMEM budget
    weight_buffers = 1 if single_buffer_weights else 2
    tile_b, footprint = _choose_tile_b(batch, in_pad, padded_params, budget,
                                       weight_buffers)

    b_pad = _round_up(batch, tile_b)
    x_p = x
    if (b_pad, in_pad) != (batch, input_size):
        x_p = jnp.zeros((b_pad, in_pad), x.dtype).at[:batch, :input_size].set(x)

    flat_params = []
    for w, b in padded_params:
        flat_params.extend([w, b])

    kernel = make_mlp_kernel(num_layers, mlp_type, out_features, use_bf16)

    in_specs = [pl.BlockSpec((tile_b, in_pad), lambda i: (i, 0))]
    for p in flat_params:
        if single_buffer_weights:
            # Constant block index -> VMEM-resident, DMA'd once; single-buffered so
            # the wasted second pipeline buffer is eliminated.
            spec = pl.BlockSpec(p.shape, lambda i: (0, 0),
                                pipeline_mode=pl.Buffered(1))
        else:
            spec = pl.BlockSpec(p.shape, lambda i: (0, 0))
        in_specs.append(spec)
    out_specs = pl.BlockSpec((tile_b, out_pad), lambda i: (i, 0))

    # Advisory cost estimate for the XLA scheduler.
    flops = 2 * b_pad * sum(w.shape[0] * w.shape[1] for w, _ in padded_params)
    transcendentals = b_pad * out_pad if mlp_type in ("cls_multi", "cls_bin") else 0
    bytes_accessed = (x_p.size * x_p.dtype.itemsize
                      + sum(p.size * p.dtype.itemsize for p in flat_params)
                      + b_pad * out_pad * 4)

    vmem_limit = max(32 << 20, min(int(vmem_capacity * 0.9), footprint + (16 << 20)))

    out = pl.pallas_call(
        kernel,
        out_shape=jax.ShapeDtypeStruct((b_pad, out_pad), jnp.float32),
        grid=(b_pad // tile_b,),
        in_specs=in_specs,
        out_specs=out_specs,
        compiler_params=pltpu.CompilerParams(
            dimension_semantics=("parallel",),
            vmem_limit_bytes=vmem_limit,
        ),
        cost_estimate=pl.CostEstimate(
            flops=flops, transcendentals=transcendentals,
            bytes_accessed=bytes_accessed),
    )(x_p, *flat_params)

    return out[:batch, :out_features]


def mlp_forward_pallas(x, params, mlp_type, *, use_bf16_matmul=True):
    vmem_capacity, lane_align = _device_info()
    try:
        return jax.block_until_ready(_mlp_pallas_call(
            x, params, mlp_type, use_bf16_matmul, single_buffer_weights=True,
            vmem_capacity=vmem_capacity, lane_align=lane_align))
    except NotImplementedError:
        raise
    except Exception:
        # Fallback if this backend/runtime rejects pl.Buffered(1) single-buffering.
        return jax.block_until_ready(_mlp_pallas_call(
            x, params, mlp_type, use_bf16_matmul, single_buffer_weights=False,
            vmem_capacity=vmem_capacity, lane_align=lane_align))


def mlp_forward_ref(x, params, mlp_type):
    """Pure-JAX reference of the PyTorch forward for verification."""
    hp = jax.lax.Precision.HIGHEST
    h = x
    for w, b in params[:-1]:
        h = jnp.maximum(jnp.dot(h, w, precision=hp) + b, 0.0)
    w, b = params[-1]
    logits = jnp.dot(h, w, precision=hp) + b
    if mlp_type == "cls_multi":
        return jax.nn.softmax(logits, axis=1)
    if mlp_type == "cls_bin":
        return jax.nn.sigmoid(logits)
    return logits


if __name__ == "__main__":
    # Small shapes consistent with the module's forward: x is [batch, input_size].
    batch = 8
    input_size = 32
    hidden_sizes = [64, 32]
    output_size = 16

    key = jax.random.PRNGKey(0)
    key, kx = jax.random.split(key)
    x = jax.random.normal(kx, (batch, input_size), dtype=jnp.float32)
    params = init_mlp_params(key, input_size, hidden_sizes, output_size)

    for mlp_type in ("cls_multi", "cls_bin", "reg"):
        ref = mlp_forward_ref(x, params, mlp_type)

        # Default path: bf16 MXU operands, f32 accumulation.
        out = mlp_forward_pallas(x, params, mlp_type)
        assert out.shape == (batch, output_size)
        assert jnp.allclose(out, ref, atol=2e-2, rtol=2e-2), f"bf16 mismatch ({mlp_type})"

        # f32-operand path: tight correctness check.
        out32 = mlp_forward_pallas(x, params, mlp_type, use_bf16_matmul=False)
        assert jnp.allclose(out32, ref, atol=2e-3, rtol=2e-3), f"f32 mismatch ({mlp_type})"

        if mlp_type == "cls_multi":
            # Exact in-kernel normalization -> rows sum to 1 (padded lanes masked).
            assert jnp.allclose(jnp.sum(out, axis=1), 1.0, atol=1e-3)
            assert jnp.allclose(jnp.sum(out32, axis=1), 1.0, atol=1e-3)

    print("KERNEL_OK")
</pallas_src>

<mosaic_0001>
module attributes {stable_mosaic.version = 11 : i64} {
  func.func @kernel(%arg0: i32, %arg1: memref<8x128xf32, #tpu.memory_space<vmem>>, %arg2: memref<128x128xbf16, #tpu.memory_space<vmem>>, %arg3: memref<1x128xf32, #tpu.memory_space<vmem>>, %arg4: memref<128x128xbf16, #tpu.memory_space<vmem>>, %arg5: memref<1x128xf32, #tpu.memory_space<vmem>>, %arg6: memref<128x128xbf16, #tpu.memory_space<vmem>>, %arg7: memref<1x128xf32, #tpu.memory_space<vmem>>, %arg8: memref<8x128xf32, #tpu.memory_space<vmem>>) attributes {dimension_semantics = [#tpu.dimension_semantics<parallel>], iteration_bounds = array<i64: 1>, scalar_prefetch = 0 : i64, scratch_operands = 0 : i64, tpu.core_type = #tpu.core_type<tc>, window_params = [{transform_indices = @transform_0, window_bounds = array<i64: 8, 128>}, {pipeline_mode = #tpu.pipeline_mode<synchronous>, transform_indices = @transform_1, window_bounds = array<i64: 128, 128>}, {pipeline_mode = #tpu.pipeline_mode<synchronous>, transform_indices = @transform_2, window_bounds = array<i64: 1, 128>}, {pipeline_mode = #tpu.pipeline_mode<synchronous>, transform_indices = @transform_3, window_bounds = array<i64: 128, 128>}, {pipeline_mode = #tpu.pipeline_mode<synchronous>, transform_indices = @transform_4, window_bounds = array<i64: 1, 128>}, {pipeline_mode = #tpu.pipeline_mode<synchronous>, transform_indices = @transform_5, window_bounds = array<i64: 128, 128>}, {pipeline_mode = #tpu.pipeline_mode<synchronous>, transform_indices = @transform_6, window_bounds = array<i64: 1, 128>}, {transform_indices = @transform_7, window_bounds = array<i64: 8, 128>}]} {
    %c0 = arith.constant 0 : index
    %c0_0 = arith.constant 0 : index
    %0 = vector.load %arg1[%c0, %c0_0] : memref<8x128xf32, #tpu.memory_space<vmem>>, vector<8x128xf32>
    %1 = arith.truncf %0 : vector<8x128xf32> to vector<8x128xbf16>
    %c0_1 = arith.constant 0 : index
    %c0_2 = arith.constant 0 : index
    %2 = vector.load %arg2[%c0_1, %c0_2] : memref<128x128xbf16, #tpu.memory_space<vmem>>, vector<128x128xbf16>
    %c0_3 = arith.constant 0 : index
    %c0_4 = arith.constant 0 : index
    %3 = vector.load %arg3[%c0_3, %c0_4] : memref<1x128xf32, #tpu.memory_space<vmem>>, vector<1x128xf32>
    %cst = arith.constant dense<0.000000e+00> : vector<8x128xf32>
    %4 = tpu.matmul %1, %2, %cst {dimension_numbers = #tpu.dot_dimension_numbers<[1], [0], [0], [1], [0, 0, 1, 1], [], []>} : vector<8x128xbf16>, vector<128x128xbf16>, vector<8x128xf32> -> vector<8x128xf32>
    %5 = vector.broadcast %3 : vector<1x128xf32> to vector<8x128xf32>
    %6 = arith.addf %4, %5 : vector<8x128xf32>
    %cst_5 = arith.constant 0.000000e+00 : f32
    %7 = vector.broadcast %cst_5 : f32 to vector<8x128xf32>
    %8 = arith.maximumf %6, %7 : vector<8x128xf32>
    %9 = arith.truncf %8 : vector<8x128xf32> to vector<8x128xbf16>
    %c0_6 = arith.constant 0 : index
    %c0_7 = arith.constant 0 : index
    %10 = vector.load %arg4[%c0_6, %c0_7] : memref<128x128xbf16, #tpu.memory_space<vmem>>, vector<128x128xbf16>
    %c0_8 = arith.constant 0 : index
    %c0_9 = arith.constant 0 : index
    %11 = vector.load %arg5[%c0_8, %c0_9] : memref<1x128xf32, #tpu.memory_space<vmem>>, vector<1x128xf32>
    %cst_10 = arith.constant dense<0.000000e+00> : vector<8x128xf32>
    %12 = tpu.matmul %9, %10, %cst_10 {dimension_numbers = #tpu.dot_dimension_numbers<[1], [0], [0], [1], [0, 0, 1, 1], [], []>} : vector<8x128xbf16>, vector<128x128xbf16>, vector<8x128xf32> -> vector<8x128xf32>
    %13 = vector.broadcast %11 : vector<1x128xf32> to vector<8x128xf32>
    %14 = arith.addf %12, %13 : vector<8x128xf32>
    %cst_11 = arith.constant 0.000000e+00 : f32
    %15 = vector.broadcast %cst_11 : f32 to vector<8x128xf32>
    %16 = arith.maximumf %14, %15 : vector<8x128xf32>
    %17 = arith.truncf %16 : vector<8x128xf32> to vector<8x128xbf16>
    %c0_12 = arith.constant 0 : index
    %c0_13 = arith.constant 0 : index
    %18 = vector.load %arg6[%c0_12, %c0_13] : memref<128x128xbf16, #tpu.memory_space<vmem>>, vector<128x128xbf16>
    %c0_14 = arith.constant 0 : index
    %c0_15 = arith.constant 0 : index
    %19 = vector.load %arg7[%c0_14, %c0_15] : memref<1x128xf32, #tpu.memory_space<vmem>>, vector<1x128xf32>
    %cst_16 = arith.constant dense<0.000000e+00> : vector<8x128xf32>
    %20 = tpu.matmul %17, %18, %cst_16 {dimension_numbers = #tpu.dot_dimension_numbers<[1], [0], [0], [1], [0, 0, 1, 1], [], []>} : vector<8x128xbf16>, vector<128x128xbf16>, vector<8x128xf32> -> vector<8x128xf32>
    %21 = vector.broadcast %19 : vector<1x128xf32> to vector<8x128xf32>
    %22 = arith.addf %20, %21 : vector<8x128xf32>
    %23 = tpu.iota {dimensions = array<i32: 1>} : vector<8x128xi32>
    %c16_i32 = arith.constant 16 : i32
    %24 = vector.broadcast %c16_i32 : i32 to vector<8x128xi32>
    %25 = arith.cmpi slt, %23, %24 : vector<8x128xi32>
    %cst_17 = arith.constant -1.000000e+30 : f32
    %26 = vector.broadcast %cst_17 : f32 to vector<8x128xf32>
    %27 = arith.select %25, %22, %26 : vector<8x128xi1>, vector<8x128xf32>
    %cst_18 = arith.constant dense<0xFF800000> : vector<8xf32>
    %28 = vector.multi_reduction <maximumf>, %27, %cst_18 [1] : vector<8x128xf32> to vector<8xf32>
    %29 = vector.shape_cast %28 : vector<8xf32> to vector<8x1xf32>
    %30 = vector.broadcast %29 : vector<8x1xf32> to vector<8x128xf32>
    %31 = arith.subf %27, %30 : vector<8x128xf32>
    %32 = math.exp %31 : vector<8x128xf32>
    %cst_19 = arith.constant dense<0.000000e+00> : vector<8xf32>
    %33 = vector.multi_reduction <add>, %32, %cst_19 [1] : vector<8x128xf32> to vector<8xf32>
    %34 = vector.shape_cast %33 : vector<8xf32> to vector<8x1xf32>
    %35 = vector.broadcast %34 : vector<8x1xf32> to vector<8x128xf32>
    %36 = arith.divf %32, %35 : vector<8x128xf32>
    %c0_20 = arith.constant 0 : index
    %c0_21 = arith.constant 0 : index
    %37 = vector.load %arg8[%c0_20, %c0_21] : memref<8x128xf32, #tpu.memory_space<vmem>>, vector<8x128xf32>
    tpu.vector_store %arg8[%c0_20, %c0_21], %36 {strides = array<i32>} : memref<8x128xf32, #tpu.memory_space<vmem>>, vector<8x128xf32>,
    return
  }
  func.func @transform_0(%arg0: i32) -> (i32, i32) {
    %c0_i32 = arith.constant 0 : i32
    %c0_i32_0 = arith.constant 0 : i32
    return %arg0, %c0_i32 : i32, i32
  }
  func.func @transform_1(%arg0: i32) -> (i32, i32) {
    %c0_i32 = arith.constant 0 : i32
    %c0_i32_0 = arith.constant 0 : i32
    %c0_i32_1 = arith.constant 0 : i32
    return %c0_i32, %c0_i32_0 : i32, i32
  }
  func.func @transform_2(%arg0: i32) -> (i32, i32) {
    %c0_i32 = arith.constant 0 : i32
    %c0_i32_0 = arith.constant 0 : i32
    %c0_i32_1 = arith.constant 0 : i32
    return %c0_i32, %c0_i32_0 : i32, i32
  }
  func.func @transform_3(%arg0: i32) -> (i32, i32) {
    %c0_i32 = arith.constant 0 : i32
    %c0_i32_0 = arith.constant 0 : i32
    %c0_i32_1 = arith.constant 0 : i32
    return %c0_i32, %c0_i32_0 : i32, i32
  }
  func.func @transform_4(%arg0: i32) -> (i32, i32) {
    %c0_i32 = arith.constant 0 : i32
    %c0_i32_0 = arith.constant 0 : i32
    %c0_i32_1 = arith.constant 0 : i32
    return %c0_i32, %c0_i32_0 : i32, i32
  }
  func.func @transform_5(%arg0: i32) -> (i32, i32) {
    %c0_i32 = arith.constant 0 : i32
    %c0_i32_0 = arith.constant 0 : i32
    %c0_i32_1 = arith.constant 0 : i32
    return %c0_i32, %c0_i32_0 : i32, i32
  }
  func.func @transform_6(%arg0: i32) -> (i32, i32) {
    %c0_i32 = arith.constant 0 : i32
    %c0_i32_0 = arith.constant 0 : i32
    %c0_i32_1 = arith.constant 0 : i32
    return %c0_i32, %c0_i32_0 : i32, i32
  }
  func.func @transform_7(%arg0: i32) -> (i32, i32) {
    %c0_i32 = arith.constant 0 : i32
    %c0_i32_0 = arith.constant 0 : i32
    return %arg0, %c0_i32 : i32, i32
  }
}

module attributes {stable_mosaic.version = 11 : i64} {
  func.func @kernel(%arg0: i32, %arg1: memref<8x128xf32, #tpu.memory_space<vmem>>, %arg2: memref<128x128xbf16, #tpu.memory_space<vmem>>, %arg3: memref<1x128xf32, #tpu.memory_space<vmem>>, %arg4: memref<128x128xbf16, #tpu.memory_space<vmem>>, %arg5: memref<1x128xf32, #tpu.memory_space<vmem>>, %arg6: memref<128x128xbf16, #tpu.memory_space<vmem>>, %arg7: memref<1x128xf32, #tpu.memory_space<vmem>>, %arg8: memref<8x128xf32, #tpu.memory_space<vmem>>) attributes {dimension_semantics = [#tpu.dimension_semantics<parallel>], iteration_bounds = array<i64: 1>, scalar_prefetch = 0 : i64, scratch_operands = 0 : i64, tpu.core_type = #tpu.core_type<tc>, window_params = [{transform_indices = @transform_0, window_bounds = array<i64: 8, 128>}, {pipeline_mode = #tpu.pipeline_mode<synchronous>, transform_indices = @transform_1, window_bounds = array<i64: 128, 128>}, {pipeline_mode = #tpu.pipeline_mode<synchronous>, transform_indices = @transform_2, window_bounds = array<i64: 1, 128>}, {pipeline_mode = #tpu.pipeline_mode<synchronous>, transform_indices = @transform_3, window_bounds = array<i64: 128, 128>}, {pipeline_mode = #tpu.pipeline_mode<synchronous>, transform_indices = @transform_4, window_bounds = array<i64: 1, 128>}, {pipeline_mode = #tpu.pipeline_mode<synchronous>, transform_indices = @transform_5, window_bounds = array<i64: 128, 128>}, {pipeline_mode = #tpu.pipeline_mode<synchronous>, transform_indices = @transform_6, window_bounds = array<i64: 1, 128>}, {transform_indices = @transform_7, window_bounds = array<i64: 8, 128>}]} {
    %c0 = arith.constant 0 : index
    %c0_0 = arith.constant 0 : index
    %0 = vector.load %arg1[%c0, %c0_0] : memref<8x128xf32, #tpu.memory_space<vmem>>, vector<8x128xf32>
    %1 = arith.truncf %0 : vector<8x128xf32> to vector<8x128xbf16>
    %c0_1 = arith.constant 0 : index
    %c0_2 = arith.constant 0 : index
    %2 = vector.load %arg2[%c0_1, %c0_2] : memref<128x128xbf16, #tpu.memory_space<vmem>>, vector<128x128xbf16>
    %c0_3 = arith.constant 0 : index
    %c0_4 = arith.constant 0 : index
    %3 = vector.load %arg3[%c0_3, %c0_4] : memref<1x128xf32, #tpu.memory_space<vmem>>, vector<1x128xf32>
    %cst = arith.constant dense<0.000000e+00> : vector<8x128xf32>
    %4 = tpu.matmul %1, %2, %cst {dimension_numbers = #tpu.dot_dimension_numbers<[1], [0], [0], [1], [0, 0, 1, 1], [], []>} : vector<8x128xbf16>, vector<128x128xbf16>, vector<8x128xf32> -> vector<8x128xf32>
    %5 = vector.broadcast %3 : vector<1x128xf32> to vector<8x128xf32>
    %6 = arith.addf %4, %5 : vector<8x128xf32>
    %cst_5 = arith.constant 0.000000e+00 : f32
    %7 = vector.broadcast %cst_5 : f32 to vector<8x128xf32>
    %8 = arith.maximumf %6, %7 : vector<8x128xf32>
    %9 = arith.truncf %8 : vector<8x128xf32> to vector<8x128xbf16>
    %c0_6 = arith.constant 0 : index
    %c0_7 = arith.constant 0 : index
    %10 = vector.load %arg4[%c0_6, %c0_7] : memref<128x128xbf16, #tpu.memory_space<vmem>>, vector<128x128xbf16>
    %c0_8 = arith.constant 0 : index
    %c0_9 = arith.constant 0 : index
    %11 = vector.load %arg5[%c0_8, %c0_9] : memref<1x128xf32, #tpu.memory_space<vmem>>, vector<1x128xf32>
    %cst_10 = arith.constant dense<0.000000e+00> : vector<8x128xf32>
    %12 = tpu.matmul %9, %10, %cst_10 {dimension_numbers = #tpu.dot_dimension_numbers<[1], [0], [0], [1], [0, 0, 1, 1], [], []>} : vector<8x128xbf16>, vector<128x128xbf16>, vector<8x128xf32> -> vector<8x128xf32>
    %13 = vector.broadcast %11 : vector<1x128xf32> to vector<8x128xf32>
    %14 = arith.addf %12, %13 : vector<8x128xf32>
    %cst_11 = arith.constant 0.000000e+00 : f32
    %15 = vector.broadcast %cst_11 : f32 to vector<8x128xf32>
    %16 = arith.maximumf %14, %15 : vector<8x128xf32>
    %17 = arith.truncf %16 : vector<8x128xf32> to vector<8x128xbf16>
    %c0_12 = arith.constant 0 : index
    %c0_13 = arith.constant 0 : index
    %18 = vector.load %arg6[%c0_12, %c0_13] : memref<128x128xbf16, #tpu.memory_space<vmem>>, vector<128x128xbf16>
    %c0_14 = arith.constant 0 : index
    %c0_15 = arith.constant 0 : index
    %19 = vector.load %arg7[%c0_14, %c0_15] : memref<1x128xf32, #tpu.memory_space<vmem>>, vector<1x128xf32>
    %cst_16 = arith.constant dense<0.000000e+00> : vector<8x128xf32>
    %20 = tpu.matmul %17, %18, %cst_16 {dimension_numbers = #tpu.dot_dimension_numbers<[1], [0], [0], [1], [0, 0, 1, 1], [], []>} : vector<8x128xbf16>, vector<128x128xbf16>, vector<8x128xf32> -> vector<8x128xf32>
    %21 = vector.broadcast %19 : vector<1x128xf32> to vector<8x128xf32>
    %22 = arith.addf %20, %21 : vector<8x128xf32>
    %23 = tpu.iota {dimensions = array<i32: 1>} : vector<8x128xi32>
    %c16_i32 = arith.constant 16 : i32
    %24 = vector.broadcast %c16_i32 : i32 to vector<8x128xi32>
    %25 = arith.cmpi slt, %23, %24 : vector<8x128xi32>
    %cst_17 = arith.constant -1.000000e+30 : f32
    %26 = vector.broadcast %cst_17 : f32 to vector<8x128xf32>
    %27 = arith.select %25, %22, %26 : vector<8x128xi1>, vector<8x128xf32>
    %cst_18 = arith.constant dense<0xFF800000> : vector<8xf32>
    %28 = vector.multi_reduction <maximumf>, %27, %cst_18 [1] : vector<8x128xf32> to vector<8xf32>
    %29 = vector.shape_cast %28 : vector<8xf32> to vector<8x1xf32>
    %30 = vector.broadcast %29 : vector<8x1xf32> to vector<8x128xf32>
    %31 = arith.subf %27, %30 : vector<8x128xf32>
    %32 = math.exp %31 : vector<8x128xf32>
    %cst_19 = arith.constant dense<0.000000e+00> : vector<8xf32>
    %33 = vector.multi_reduction <add>, %32, %cst_19 [1] : vector<8x128xf32> to vector<8xf32>
    %34 = vector.shape_cast %33 : vector<8xf32> to vector<8x1xf32>
    %35 = vector.broadcast %34 : vector<8x1xf32> to vector<8x128xf32>
    %36 = arith.divf %32, %35 : vector<8x128xf32>
    %c0_20 = arith.constant 0 : index
    %c0_21 = arith.constant 0 : index
    %37 = vector.load %arg8[%c0_20, %c0_21] : memref<8x128xf32, #tpu.memory_space<vmem>>, vector<8x128xf32>
    tpu.vector_store %arg8[%c0_20, %c0_21], %36 {strides = array<i32>} : memref<8x128xf32, #tpu.memory_space<vmem>>, vector<8x128xf32>,
    return
  }
  func.func @transform_0(%arg0: i32) -> (i32, i32) {
    %c0_i32 = arith.constant 0 : i32
    %c0_i32_0 = arith.constant 0 : i32
    return %arg0, %c0_i32 : i32, i32
  }
  func.func @transform_1(%arg0: i32) -> (i32, i32) {
    %c0_i32 = arith.constant 0 : i32
    %c0_i32_0 = arith.constant 0 : i32
    %c0_i32_1 = arith.constant 0 : i32
    return %c0_i32, %c0_i32_0 : i32, i32
  }
  func.func @transform_2(%arg0: i32) -> (i32, i32) {
    %c0_i32 = arith.constant 0 : i32
    %c0_i32_0 = arith.constant 0 : i32
    %c0_i32_1 = arith.constant 0 : i32
    return %c0_i32, %c0_i32_0 : i32, i32
  }
  func.func @transform_3(%arg0: i32) -> (i32, i32) {
    %c0_i32 = arith.constant 0 : i32
    %c0_i32_0 = arith.constant 0 : i32
    %c0_i32_1 = arith.constant 0 : i32
    return %c0_i32, %c0_i32_0 : i32, i32
  }
  func.func @transform_4(%arg0: i32) -> (i32, i32) {
    %c0_i32 = arith.constant 0 : i32
    %c0_i32_0 = arith.constant 0 : i32
    %c0_i32_1 = arith.constant 0 : i32
    return %c0_i32, %c0_i32_0 : i32, i32
  }
  func.func @transform_5(%arg0: i32) -> (i32, i32) {
    %c0_i32 = arith.constant 0 : i32
    %c0_i32_0 = arith.constant 0 : i32
    %c0_i32_1 = arith.constant 0 : i32
    return %c0_i32, %c0_i32_0 : i32, i32
  }
  func.func @transform_6(%arg0: i32) -> (i32, i32) {
    %c0_i32 = arith.constant 0 : i32
    %c0_i32_0 = arith.constant 0 : i32
    %c0_i32_1 = arith.constant 0 : i32
    return %c0_i32, %c0_i32_0 : i32, i32
  }
  func.func @transform_7(%arg0: i32) -> (i32, i32) {
    %c0_i32 = arith.constant 0 : i32
    %c0_i32_0 = arith.constant 0 : i32
    return %arg0, %c0_i32 : i32, i32
  }
}

</mosaic_0001>

<bundles_post_ra>
// kernel: tpu_custom_call.1
= control target key start
LH: loop header
LB: loop body
LE: loop exit
PB: predicated region body
PF: predicated region fallthrough
CT: control target
= control target key end

     0   :  { %12 = vsyncpa [#allocation3], 0  ;;  %s822_s0 = inlined_call_operand.hbm [shape: f32[8,128], index: 0, kind: input, shape index: {}]   ;;  %s823_s1 = inlined_call_operand.hbm [shape: bf16[128,128], index: 1, kind: input, shape index: {}]   ;;  %s824_s2 = inlined_call_operand.vmem [shape: f32[1,128], index: 2, kind: input, shape index: {}]   ;;  %s825_s3 = inlined_call_operand.hbm [shape: bf16[128,128], index: 3, kind: input, shape index: {}]   ;;  %s826_s4 = inlined_call_operand.vmem [shape: f32[1,128], index: 4, kind: input, shape index: {}]   ;;  %s827_s5 = inlined_call_operand.hbm [shape: bf16[128,128], index: 5, kind: input, shape index: {}]   ;;  %s828_s6 = inlined_call_operand.vmem [shape: f32[1,128], index: 6, kind: input, shape index: {}]   ;;  %s829_s7 = inlined_call_operand.hbm [shape: f32[8,128], index: 7, kind: output, shape index: {}]  }
   0x1   :  { %13 = vsyncpa [#allocation6], 0 }
   0x2   :  { %14 = vsyncpa [#allocation9], 0 }
   0x3   :  { %15 = vsyncpa [#allocation4], 0  ;;  %s710_s24 = smov [#allocation5]  }
   0x4   :  { %s31_s25 = sshll.u32 %s710_s24, 4  ;;  %s32_s25 = int_to_ptr.vmem [resolvable:$true] %s31_s25 }
   0x5   :  { %s610_s26 = scalar_lea.vmem %s32_s25, 1024  ;;  %p615_p1 = scmp.lt.s32.totalorder %s32_s25, %s32_s25 }
   0x6   :  { %p611_p0 = scmp.ne.s32.totalorder %s32_s25, %s610_s26  ;;  %p616_p2 = scmp.lt.s32.totalorder %s610_s26, %s610_s26 }
   0x8   :  { %p617_p3 = por %p616_p2, %p615_p1 }
   0xa   :  { %p618_p4 = pnand %p617_p3, %p611_p0 }
   0xc   :  { %621 = shalt.err (!%p618_p4)
}
   0xd   :  { %s711_s27 = smov 64   ;;  %s712_s28 = smov 4  }
   0xe   :  { %37 = dma.hbm_to_vmem [thread:$0]  %s823_s1, 1024, %s32_s25, [#allocation6], %s711_s27, %s711_s27, %s712_s28  }
   0xf   :  { %s713_s8 = smov [#allocation2]   ;;  %s714_s10 = smov [#allocation7]  }
  0x10   :  { %s22_s9 = sshll.u32 %s713_s8, 4  ;;  %s45_s11 = sshll.u32 %s714_s10, 4  ;;  %s23_s9 = int_to_ptr.vmem [resolvable:$true] %s22_s9  ;;  %s46_s11 = int_to_ptr.vmem [resolvable:$true] %s45_s11 }
  0x11   :  { %s630_s12 = scalar_lea.vmem %s23_s9, 128  ;;  %p635_p6 = scmp.lt.s32.totalorder %s23_s9, %s23_s9 }
  0x12   :  { %p631_p5 = scmp.ne.s32.totalorder %s23_s9, %s630_s12  ;;  %p636_p7 = scmp.lt.s32.totalorder %s630_s12, %s630_s12 }
  0x14   :  { %p637_p8 = por %p636_p7, %p635_p6 }
  0x16   :  { %p638_p9 = pnand %p637_p8, %p631_p5 }
  0x18   :  { %641 = shalt.err (!%p638_p9)
}
  0x19   :  { %25 = dma.hbm_to_vmem [thread:$0]  %s822_s0, 128, %s23_s9, [#allocation3]  }
  0x1a   :  { %s650_s15 = scalar_lea.vmem %s46_s11, 1024  ;;  %p655_p11 = scmp.lt.s32.totalorder %s46_s11, %s46_s11 }
  0x1b   :  { %p651_p10 = scmp.ne.s32.totalorder %s46_s11, %s650_s15  ;;  %p656_p12 = scmp.lt.s32.totalorder %s650_s15, %s650_s15 }
  0x1d   :  { %p657_p13 = por %p656_p12, %p655_p11 }
  0x1f   :  { %p658_p0 = pnand %p657_p13, %p651_p10 }
  0x21   :  { %661 = shalt.err (!%p658_p0)
}
  0x22   :  { %51 = dma.hbm_to_vmem [thread:$0]  %s825_s3, 1024, %s46_s11, [#allocation6], %s711_s27, %s711_s27, %s712_s28  }
  0x23   :  { %s715_s17 = smov [#allocation8]  }
  0x24   :  { %s59_s18 = sshll.u32 %s715_s17, 4  ;;  %s60_s18 = int_to_ptr.vmem [resolvable:$true] %s59_s18 }
  0x25   :  { %s670_s19 = scalar_lea.vmem %s60_s18, 1024  ;;  %p675_p2 = scmp.lt.s32.totalorder %s60_s18, %s60_s18 }
  0x26   :  { %p671_p1 = scmp.ne.s32.totalorder %s60_s18, %s670_s19  ;;  %p676_p3 = scmp.lt.s32.totalorder %s670_s19, %s670_s19 }
  0x28   :  { %p677_p4 = por %p676_p3, %p675_p2 }
  0x2a   :  { %p678_p5 = pnand %p677_p4, %p671_p1 }
  0x2c   :  { %681 = shalt.err (!%p678_p5)
}
  0x2d   :  { %65 = dma.hbm_to_vmem [thread:$0]  %s827_s5, 1024, %s60_s18, [#allocation9], %s711_s27, %s711_s27, %s712_s28  }
  0x2e   :  { %702 = dma.done.wait [#allocation3], 128  }
  0x2f   :  { %703 = vsyncadd [#allocation3], 4294967168 }
  0x30   :  { %704 = dma.done.wait [#allocation6], 2048  }
  0x31   :  { %705 = vsyncadd [#allocation6], 4294965248 }
  0x32   :  { %706 = dma.done.wait [#allocation9], 1024  }
  0x33   :  { %707 = vsyncadd [#allocation9], 4294966272  ;;  %v716_v0 = vmov 0.0   ;;  %vm717_vm0 = vmmov 0   ;;  %v574_v1 = vld [vmem:[#allocation5 + $0x38] sm:$0xff]   ;;  %v575_v2 = vld [vmem:[#allocation5 + $0x30] sm:$0xff]   ;;  %v420_v43 = vlaneseq }
  0x34   :  { %505 = vmatprep.subr.bf16.mxu0 %v716_v0  ;;  %521 = vmatprep.mubr.msk.bf16.mxu0 %vm717_vm0, %v716_v0  ;;  %v576_v3 = vld [vmem:[#allocation5 + $0x28] sm:$0xff]   ;;  %v582_v4 = vld [vmem:[#allocation7 + $0x38] sm:$0xff]   ;;  %v577_v5 = vld [vmem:[#allocation5 + $0x20] sm:$0xff]  }
  0x35   :  { %525 = vmatprep.subr.bf16.mxu1 %v716_v0  ;;  %541 = vmatprep.mubr.msk.bf16.mxu1 %vm717_vm0, %v716_v0  ;;  %v583_v6 = vld [vmem:[#allocation7 + $0x30] sm:$0xff]   ;;  %v578_v7 = vld [vmem:[#allocation5 + $0x18] sm:$0xff]   ;;  %v584_v8 = vld [vmem:[#allocation7 + $0x28] sm:$0xff]   ;;  %v421_v44 = vand.u32 127, %v420_v43 }
  0x36   :  { %506 = vmatpush3.bf16.msra.mxu0 %v574_v1  ;;  %526 = vmatpush3.bf16.msra.mxu1 %v582_v4  ;;  %v579_v9 = vld [vmem:[#allocation5 + $0x10] sm:$0xff]   ;;  %v585_v10 = vld [vmem:[#allocation7 + $0x20] sm:$0xff]   ;;  %v580_v11 = vld [vmem:[#allocation5 + $0x8] sm:$0xff]  }
  0x37   :  { %507 = vmatprep.subr.bf16.mxu0 %v716_v0  ;;  %527 = vmatprep.subr.bf16.mxu1 %v716_v0  ;;  %v586_v12 = vld [vmem:[#allocation7 + $0x18] sm:$0xff]   ;;  %v581_v13 = vld [vmem:[#allocation5] sm:$0xff]   ;;  %v587_v15 = vld [vmem:[#allocation7 + $0x10] sm:$0xff]   ;;  %vm422_vm1 = vcmp.lt.s32.totalorder %v421_v44, 16 }
  0x38   :  { %v81_v14 = vld [vmem:[#allocation2] sm:$0xff]  ;;  %v588_v17 = vld [vmem:[#allocation7 + $0x8] sm:$0xff]   ;;  %v589_v18 = vld [vmem:[#allocation7] sm:$0xff]  }
  0x39   :  { %v82_v16 = vpack.c.bf16 %v81_v14, %v81_v14  ;;  %v590_v19 = vld [vmem:[#allocation8 + $0x38] sm:$0xff]   ;;  %v591_v20 = vld [vmem:[#allocation8 + $0x30] sm:$0xff]   ;;  %v592_v21 = vld [vmem:[#allocation8 + $0x28] sm:$0xff]  }
  0x3a   :  { %508 = vmatpush3.bf16.msra.mxu0 %v575_v2  ;;  %528 = vmatpush3.bf16.msra.mxu1 %v583_v6  ;;  %v593_v22 = vld [vmem:[#allocation8 + $0x20] sm:$0xff]   ;;  %v594_v23 = vld [vmem:[#allocation8 + $0x18] sm:$0xff]   ;;  %v595_v24 = vld [vmem:[#allocation8 + $0x10] sm:$0xff]  }
  0x3b   :  { %509 = vmatprep.subr.bf16.mxu0 %v716_v0  ;;  %529 = vmatprep.subr.bf16.mxu1 %v716_v0  ;;  %v451_v25 = vld [vmem:[%s824_s2] ss:$0 sm:$0xff]  ;;  %v596_v33 = vld [vmem:[#allocation8 + $0x8] sm:$0xff]   ;;  %v597_v34 = vld [vmem:[#allocation8] sm:$0xff]  }
  0x3c   :  { %v460_v35 = vld [vmem:[%s826_s4] ss:$0 sm:$0xff]  ;;  %s718_s4 = smov [#allocation10]  }
  0x3d   :  { %v469_v45 = vld [vmem:[%s828_s6] ss:$0 sm:$0xff]  ;;  %s440_s24 = sshll.u32 %s718_s4, 4  ;;  %s441_s24 = int_to_ptr.vmem [resolvable:$true] %s440_s24 }
  0x3e   :  { %510 = vmatpush3.bf16.msra.mxu0 %v576_v3  ;;  %530 = vmatpush3.bf16.msra.mxu1 %v584_v8  ;;  %s682_s6 = scalar_lea.vmem %s441_s24, 128  ;;  %p687_p7 = scmp.lt.s32.totalorder %s441_s24, %s441_s24 }
  0x3f   :  { %511 = vmatprep.subr.bf16.mxu0 %v716_v0  ;;  %531 = vmatprep.subr.bf16.mxu1 %v716_v0  ;;  %p683_p6 = scmp.ne.s32.totalorder %s441_s24, %s682_s6  ;;  %p688_p8 = scmp.lt.s32.totalorder %s682_s6, %s682_s6 }
  0x41   :  { %p689_p9 = por %p688_p8, %p687_p7 }
  0x42   :  { %512 = vmatpush3.bf16.msra.mxu0 %v577_v5  ;;  %532 = vmatpush3.bf16.msra.mxu1 %v585_v10 }
  0x43   :  { %513 = vmatprep.subr.bf16.mxu0 %v716_v0  ;;  %533 = vmatprep.subr.bf16.mxu1 %v716_v0  ;;  %p690_p10 = pnand %p689_p9, %p683_p6 }
  0x46   :  { %514 = vmatpush3.bf16.msra.mxu0 %v578_v7  ;;  %534 = vmatpush3.bf16.msra.mxu1 %v586_v12 }
  0x47   :  { %515 = vmatprep.subr.bf16.mxu0 %v716_v0  ;;  %535 = vmatprep.subr.bf16.mxu1 %v716_v0 }
  0x4a   :  { %516 = vmatpush3.bf16.msra.mxu0 %v579_v9  ;;  %536 = vmatpush3.bf16.msra.mxu1 %v587_v15 }
  0x4b   :  { %517 = vmatprep.subr.bf16.mxu0 %v716_v0  ;;  %537 = vmatprep.subr.bf16.mxu1 %v716_v0 }
  0x4e   :  { %518 = vmatpush3.bf16.msra.mxu0 %v580_v11  ;;  %538 = vmatpush3.bf16.msra.mxu1 %v588_v17 }
  0x4f   :  { %519 = vmatprep.subr.bf16.mxu0 %v716_v0  ;;  %539 = vmatprep.subr.bf16.mxu1 %v716_v0 }
  0x52   :  { %520 = vmatpush3.bf16.msra.mxu0 %v581_v13  ;;  %540 = vmatpush3.bf16.msra.mxu1 %v589_v18 }
  0x53   :  { %545 = vmatprep.subr.bf16.mxu0 %v716_v0 }
  0x55   :  { %522 = vmatmul.mubr.bf16.vlgmr.msra.gmra.mxu0 %v82_v16 }
  0x56   :  { %561 = vmatprep.mubr.msk.bf16.mxu0 %vm717_vm0, %v716_v0  ;;  %546 = vmatpush3.bf16.msra.mxu0 %v590_v19 }
  0x57   :  { %547 = vmatprep.subr.bf16.mxu0 %v716_v0 }
  0x5a   :  { %548 = vmatpush3.bf16.msra.mxu0 %v591_v20 }
  0x5b   :  { %549 = vmatprep.subr.bf16.mxu0 %v716_v0 }
  0x5e   :  { %550 = vmatpush3.bf16.msra.mxu0 %v592_v21 }
  0x5f   :  { %551 = vmatprep.subr.bf16.mxu0 %v716_v0 }
  0x62   :  { %552 = vmatpush3.bf16.msra.mxu0 %v593_v22 }
  0x63   :  { %553 = vmatprep.subr.bf16.mxu0 %v716_v0 }
  0x66   :  { %554 = vmatpush3.bf16.msra.mxu0 %v594_v23 }
  0x67   :  { %555 = vmatprep.subr.bf16.mxu0 %v716_v0 }
  0x6a   :  { %556 = vmatpush3.bf16.msra.mxu0 %v595_v24 }
  0x6b   :  { %557 = vmatprep.subr.bf16.mxu0 %v716_v0 }
  0x6e   :  { %558 = vmatpush3.bf16.msra.mxu0 %v596_v33 }
  0x6f   :  { %559 = vmatprep.subr.bf16.mxu0 %v716_v0 }
  0x72   :  { %560 = vmatpush3.bf16.msra.mxu0 %v597_v34 }
 0x115   :  { %v188_v26 = vpop.f32.mrf.mxu0 }
 0x116   :  { %v189_v27 = vadd.f32 %v451_v25, %v188_v26 }
 0x117   :  { %v523_v28 = vpop.f32.mrf.mxu0 }
 0x118   :  { %v194_v29 = vmax.f32 %v189_v27, 0.0 }
 0x119   :  { %v191_v30 = vpop.f32.mrf.mxu0 }
 0x11a   :  { %v195_v31 = vpack.c.bf16 %v194_v29, %v194_v29 }
 0x11b   :  { %v524_v32 = vpop.f32.mrf.mxu0 }
 0x11c   :  { %542 = vmatmul.mubr.bf16.vlgmr.msra.gmra.mxu1 %v195_v31 }
 0x1dc   :  { %v301_v36 = vpop.f32.mrf.mxu1 }
 0x1dd   :  { %v302_v37 = vadd.f32 %v460_v35, %v301_v36 }
 0x1de   :  { %v543_v38 = vpop.f32.mrf.mxu1 }
 0x1df   :  { %v307_v39 = vmax.f32 %v302_v37, 0.0 }
 0x1e0   :  { %v304_v40 = vpop.f32.mrf.mxu1 }
 0x1e1   :  { %v308_v41 = vpack.c.bf16 %v307_v39, %v307_v39 }
 0x1e2   :  { %v544_v42 = vpop.f32.mrf.mxu1 }
 0x1e3   :  { %562 = vmatmul.mubr.bf16.vlgmr.msra.gmra.mxu0 %v308_v41 }
 0x2a3   :  { %v414_v46 = vpop.f32.mrf.mxu0 }
 0x2a4   :  { %v415_v47 = vadd.f32 %v469_v45, %v414_v46 }
 0x2a5   :  { %v563_v48 = vpop.f32.mrf.mxu0 }
 0x2a6   :  { %v423_v49 = vsel %vm422_vm1, %v415_v47, -1e+30 }
 0x2a7   :  { %424 = vmax.xlane.f32.xlu0 %v423_v49  ;;  %v417_v50 = vpop.f32.mrf.mxu0 }
 0x2a9   :  { %v564_v51 = vpop.f32.mrf.mxu0 }
 0x330   :  { %v425_v52 = vpop.xlane.xlu0 %424 }
 0x331   :  { %v426_v53 = vsub.f32 %v423_v49, %v425_v52 }
 0x333   :  { %v427_v54 = vmul.f32 1.442695, %v426_v53 }
 0x335   :  { %598 = vpow2.f32 %v427_v54 }
 0x342   :  { %v599_v55 = vpop.eup %598 }
 0x343   :  { %429 = vadd.xlane.f32.xlu0 %v599_v55 }
 0x3cc   :  { %v430_v56 = vpop.xlane.xlu0 %429 }
 0x3cd   :  { %600 = vrcp.f32 %v430_v56 }
 0x3da   :  { %v601_v57 = vpop.eup %600 }
 0x3db   :  { %v432_v58 = vmul.f32 %v601_v57, %v599_v55 }
 0x3dd   :  { %433 = vst [vmem:[#allocation10] sm:$0xff] %v432_v58 }
 0x3de   :  { %693 = shalt.err (!%p690_p10)
}
 0x3df   :  { %443 = dma.vmem_to_hbm [thread:$0]  %s441_s24, 128, %s829_s7, [#allocation4]  }
 0x3e0   :  { %708 = dma.done.wait [#allocation4], 128  }
 0x3e1   :  { %709 = vsyncadd [#allocation4], 4294967168 }
 0x3e2   :  { %447 = vsyncpa [#allocation3], 1 }
 0x3e3   :  { %448 = vsyncpa [#allocation6], 1 }
 0x3e4   :  { %449 = vsyncpa [#allocation9], 1 }
 0x3e5   :  { %450 = vsyncpa [#allocation4], 1 }

// kernel: tpu_custom_call.1
= control target key start
LH: loop header
LB: loop body
LE: loop exit
PB: predicated region body
PF: predicated region fallthrough
CT: control target
= control target key end

     0   :  { %12 = vsyncpa [#allocation3], 0  ;;  %s822_s0 = inlined_call_operand.hbm [shape: f32[8,128], index: 0, kind: input, shape index: {}]   ;;  %s823_s1 = inlined_call_operand.hbm [shape: bf16[128,128], index: 1, kind: input, shape index: {}]   ;;  %s824_s2 = inlined_call_operand.vmem [shape: f32[1,128], index: 2, kind: input, shape index: {}]   ;;  %s825_s3 = inlined_call_operand.hbm [shape: bf16[128,128], index: 3, kind: input, shape index: {}]   ;;  %s826_s4 = inlined_call_operand.vmem [shape: f32[1,128], index: 4, kind: input, shape index: {}]   ;;  %s827_s5 = inlined_call_operand.hbm [shape: bf16[128,128], index: 5, kind: input, shape index: {}]   ;;  %s828_s6 = inlined_call_operand.vmem [shape: f32[1,128], index: 6, kind: input, shape index: {}]   ;;  %s829_s7 = inlined_call_operand.hbm [shape: f32[8,128], index: 7, kind: output, shape index: {}]  }
   0x1   :  { %13 = vsyncpa [#allocation6], 0 }
   0x2   :  { %14 = vsyncpa [#allocation9], 0 }
   0x3   :  { %15 = vsyncpa [#allocation4], 0  ;;  %s710_s24 = smov [#allocation5]  }
   0x4   :  { %s31_s25 = sshll.u32 %s710_s24, 4  ;;  %s32_s25 = int_to_ptr.vmem [resolvable:$true] %s31_s25 }
   0x5   :  { %s610_s26 = scalar_lea.vmem %s32_s25, 1024  ;;  %p615_p1 = scmp.lt.s32.totalorder %s32_s25, %s32_s25 }
   0x6   :  { %p611_p0 = scmp.ne.s32.totalorder %s32_s25, %s610_s26  ;;  %p616_p2 = scmp.lt.s32.totalorder %s610_s26, %s610_s26 }
   0x8   :  { %p617_p3 = por %p616_p2, %p615_p1 }
   0xa   :  { %p618_p4 = pnand %p617_p3, %p611_p0 }
   0xc   :  { %621 = shalt.err (!%p618_p4)
}
   0xd   :  { %s711_s27 = smov 64   ;;  %s712_s28 = smov 4  }
   0xe   :  { %37 = dma.hbm_to_vmem [thread:$0]  %s823_s1, 1024, %s32_s25, [#allocation6], %s711_s27, %s711_s27, %s712_s28  }
   0xf   :  { %s713_s8 = smov [#allocation2]   ;;  %s714_s10 = smov [#allocation7]  }
  0x10   :  { %s22_s9 = sshll.u32 %s713_s8, 4  ;;  %s45_s11 = sshll.u32 %s714_s10, 4  ;;  %s23_s9 = int_to_ptr.vmem [resolvable:$true] %s22_s9  ;;  %s46_s11 = int_to_ptr.vmem [resolvable:$true] %s45_s11 }
  0x11   :  { %s630_s12 = scalar_lea.vmem %s23_s9, 128  ;;  %p635_p6 = scmp.lt.s32.totalorder %s23_s9, %s23_s9 }
  0x12   :  { %p631_p5 = scmp.ne.s32.totalorder %s23_s9, %s630_s12  ;;  %p636_p7 = scmp.lt.s32.totalorder %s630_s12, %s630_s12 }
  0x14   :  { %p637_p8 = por %p636_p7, %p635_p6 }
  0x16   :  { %p638_p9 = pnand %p637_p8, %p631_p5 }
  0x18   :  { %641 = shalt.err (!%p638_p9)
}
  0x19   :  { %25 = dma.hbm_to_vmem [thread:$0]  %s822_s0, 128, %s23_s9, [#allocation3]  }
  0x1a   :  { %s650_s15 = scalar_lea.vmem %s46_s11, 1024  ;;  %p655_p11 = scmp.lt.s32.totalorder %s46_s11, %s46_s11 }
  0x1b   :  { %p651_p10 = scmp.ne.s32.totalorder %s46_s11, %s650_s15  ;;  %p656_p12 = scmp.lt.s32.totalorder %s650_s15, %s650_s15 }
  0x1d   :  { %p657_p13 = por %p656_p12, %p655_p11 }
  0x1f   :  { %p658_p0 = pnand %p657_p13, %p651_p10 }
  0x21   :  { %661 = shalt.err (!%p658_p0)
}
  0x22   :  { %51 = dma.hbm_to_vmem [thread:$0]  %s825_s3, 1024, %s46_s11, [#allocation6], %s711_s27, %s711_s27, %s712_s28  }
  0x23   :  { %s715_s17 = smov [#allocation8]  }
  0x24   :  { %s59_s18 = sshll.u32 %s715_s17, 4  ;;  %s60_s18 = int_to_ptr.vmem [resolvable:$true] %s59_s18 }
  0x25   :  { %s670_s19 = scalar_lea.vmem %s60_s18, 1024  ;;  %p675_p2 = scmp.lt.s32.totalorder %s60_s18, %s60_s18 }
  0x26   :  { %p671_p1 = scmp.ne.s32.totalorder %s60_s18, %s670_s19  ;;  %p676_p3 = scmp.lt.s32.totalorder %s670_s19, %s670_s19 }
  0x28   :  { %p677_p4 = por %p676_p3, %p675_p2 }
  0x2a   :  { %p678_p5 = pnand %p677_p4, %p671_p1 }
  0x2c   :  { %681 = shalt.err (!%p678_p5)
}
  0x2d   :  { %65 = dma.hbm_to_vmem [thread:$0]  %s827_s5, 1024, %s60_s18, [#allocation9], %s711_s27, %s711_s27, %s712_s28  }
  0x2e   :  { %702 = dma.done.wait [#allocation3], 128  }
  0x2f   :  { %703 = vsyncadd [#allocation3], 4294967168 }
  0x30   :  { %704 = dma.done.wait [#allocation6], 2048  }
  0x31   :  { %705 = vsyncadd [#allocation6], 4294965248 }
  0x32   :  { %706 = dma.done.wait [#allocation9], 1024  }
  0x33   :  { %707 = vsyncadd [#allocation9], 4294966272  ;;  %v716_v0 = vmov 0.0   ;;  %vm717_vm0 = vmmov 0   ;;  %v574_v1 = vld [vmem:[#allocation5 + $0x38] sm:$0xff]   ;;  %v575_v2 = vld [vmem:[#allocation5 + $0x30] sm:$0xff]   ;;  %v420_v43 = vlaneseq }
  0x34   :  { %505 = vmatprep.subr.bf16.mxu0 %v716_v0  ;;  %521 = vmatprep.mubr.msk.bf16.mxu0 %vm717_vm0, %v716_v0  ;;  %v576_v3 = vld [vmem:[#allocation5 + $0x28] sm:$0xff]   ;;  %v582_v4 = vld [vmem:[#allocation7 + $0x38] sm:$0xff]   ;;  %v577_v5 = vld [vmem:[#allocation5 + $0x20] sm:$0xff]  }
  0x35   :  { %525 = vmatprep.subr.bf16.mxu1 %v716_v0  ;;  %541 = vmatprep.mubr.msk.bf16.mxu1 %vm717_vm0, %v716_v0  ;;  %v583_v6 = vld [vmem:[#allocation7 + $0x30] sm:$0xff]   ;;  %v578_v7 = vld [vmem:[#allocation5 + $0x18] sm:$0xff]   ;;  %v584_v8 = vld [vmem:[#allocation7 + $0x28] sm:$0xff]   ;;  %v421_v44 = vand.u32 127, %v420_v43 }
  0x36   :  { %506 = vmatpush3.bf16.msra.mxu0 %v574_v1  ;;  %526 = vmatpush3.bf16.msra.mxu1 %v582_v4  ;;  %v579_v9 = vld [vmem:[#allocation5 + $0x10] sm:$0xff]   ;;  %v585_v10 = vld [vmem:[#allocation7 + $0x20] sm:$0xff]   ;;  %v580_v11 = vld [vmem:[#allocation5 + $0x8] sm:$0xff]  }
  0x37   :  { %507 = vmatprep.subr.bf16.mxu0 %v716_v0  ;;  %527 = vmatprep.subr.bf16.mxu1 %v716_v0  ;;  %v586_v12 = vld [vmem:[#allocation7 + $0x18] sm:$0xff]   ;;  %v581_v13 = vld [vmem:[#allocation5] sm:$0xff]   ;;  %v587_v15 = vld [vmem:[#allocation7 + $0x10] sm:$0xff]   ;;  %vm422_vm1 = vcmp.lt.s32.totalorder %v421_v44, 16 }
  0x38   :  { %v81_v14 = vld [vmem:[#allocation2] sm:$0xff]  ;;  %v588_v17 = vld [vmem:[#allocation7 + $0x8] sm:$0xff]   ;;  %v589_v18 = vld [vmem:[#allocation7] sm:$0xff]  }
  0x39   :  { %v82_v16 = vpack.c.bf16 %v81_v14, %v81_v14  ;;  %v590_v19 = vld [vmem:[#allocation8 + $0x38] sm:$0xff]   ;;  %v591_v20 = vld [vmem:[#allocation8 + $0x30] sm:$0xff]   ;;  %v592_v21 = vld [vmem:[#allocation8 + $0x28] sm:$0xff]  }
  0x3a   :  { %508 = vmatpush3.bf16.msra.mxu0 %v575_v2  ;;  %528 = vmatpush3.bf16.msra.mxu1 %v583_v6  ;;  %v593_v22 = vld [vmem:[#allocation8 + $0x20] sm:$0xff]   ;;  %v594_v23 = vld [vmem:[#allocation8 + $0x18] sm:$0xff]   ;;  %v595_v24 = vld [vmem:[#allocation8 + $0x10] sm:$0xff]  }
  0x3b   :  { %509 = vmatprep.subr.bf16.mxu0 %v716_v0  ;;  %529 = vmatprep.subr.bf16.mxu1 %v716_v0  ;;  %v451_v25 = vld [vmem:[%s824_s2] ss:$0 sm:$0xff]  ;;  %v596_v33 = vld [vmem:[#allocation8 + $0x8] sm:$0xff]   ;;  %v597_v34 = vld [vmem:[#allocation8] sm:$0xff]  }
  0x3c   :  { %v460_v35 = vld [vmem:[%s826_s4] ss:$0 sm:$0xff]  ;;  %s718_s4 = smov [#allocation10]  }
  0x3d   :  { %v469_v45 = vld [vmem:[%s828_s6] ss:$0 sm:$0xff]  ;;  %s440_s24 = sshll.u32 %s718_s4, 4  ;;  %s441_s24 = int_to_ptr.vmem [resolvable:$true] %s440_s24 }
  0x3e   :  { %510 = vmatpush3.bf16.msra.mxu0 %v576_v3  ;;  %530 = vmatpush3.bf16.msra.mxu1 %v584_v8  ;;  %s682_s6 = scalar_lea.vmem %s441_s24, 128  ;;  %p687_p7 = scmp.lt.s32.totalorder %s441_s24, %s441_s24 }
  0x3f   :  { %511 = vmatprep.subr.bf16.mxu0 %v716_v0  ;;  %531 = vmatprep.subr.bf16.mxu1 %v716_v0  ;;  %p683_p6 = scmp.ne.s32.totalorder %s441_s24, %s682_s6  ;;  %p688_p8 = scmp.lt.s32.totalorder %s682_s6, %s682_s6 }
  0x41   :  { %p689_p9 = por %p688_p8, %p687_p7 }
  0x42   :  { %512 = vmatpush3.bf16.msra.mxu0 %v577_v5  ;;  %532 = vmatpush3.bf16.msra.mxu1 %v585_v10 }
  0x43   :  { %513 = vmatprep.subr.bf16.mxu0 %v716_v0  ;;  %533 = vmatprep.subr.bf16.mxu1 %v716_v0  ;;  %p690_p10 = pnand %p689_p9, %p683_p6 }
  0x46   :  { %514 = vmatpush3.bf16.msra.mxu0 %v578_v7  ;;  %534 = vmatpush3.bf16.msra.mxu1 %v586_v12 }
  0x47   :  { %515 = vmatprep.subr.bf16.mxu0 %v716_v0  ;;  %535 = vmatprep.subr.bf16.mxu1 %v716_v0 }
  0x4a   :  { %516 = vmatpush3.bf16.msra.mxu0 %v579_v9  ;;  %536 = vmatpush3.bf16.msra.mxu1 %v587_v15 }
  0x4b   :  { %517 = vmatprep.subr.bf16.mxu0 %v716_v0  ;;  %537 = vmatprep.subr.bf16.mxu1 %v716_v0 }
  0x4e   :  { %518 = vmatpush3.bf16.msra.mxu0 %v580_v11  ;;  %538 = vmatpush3.bf16.msra.mxu1 %v588_v17 }
  0x4f   :  { %519 = vmatprep.subr.bf16.mxu0 %v716_v0  ;;  %539 = vmatprep.subr.bf16.mxu1 %v716_v0 }
  0x52   :  { %520 = vmatpush3.bf16.msra.mxu0 %v581_v13  ;;  %540 = vmatpush3.bf16.msra.mxu1 %v589_v18 }
  0x53   :  { %545 = vmatprep.subr.bf16.mxu0 %v716_v0 }
  0x55   :  { %522 = vmatmul.mubr.bf16.vlgmr.msra.gmra.mxu0 %v82_v16 }
  0x56   :  { %561 = vmatprep.mubr.msk.bf16.mxu0 %vm717_vm0, %v716_v0  ;;  %546 = vmatpush3.bf16.msra.mxu0 %v590_v19 }
  0x57   :  { %547 = vmatprep.subr.bf16.mxu0 %v716_v0 }
  0x5a   :  { %548 = vmatpush3.bf16.msra.mxu0 %v591_v20 }
  0x5b   :  { %549 = vmatprep.subr.bf16.mxu0 %v716_v0 }
  0x5e   :  { %550 = vmatpush3.bf16.msra.mxu0 %v592_v21 }
  0x5f   :  { %551 = vmatprep.subr.bf16.mxu0 %v716_v0 }
  0x62   :  { %552 = vmatpush3.bf16.msra.mxu0 %v593_v22 }
  0x63   :  { %553 = vmatprep.subr.bf16.mxu0 %v716_v0 }
  0x66   :  { %554 = vmatpush3.bf16.msra.mxu0 %v594_v23 }
  0x67   :  { %555 = vmatprep.subr.bf16.mxu0 %v716_v0 }
  0x6a   :  { %556 = vmatpush3.bf16.msra.mxu0 %v595_v24 }
  0x6b   :  { %557 = vmatprep.subr.bf16.mxu0 %v716_v0 }
  0x6e   :  { %558 = vmatpush3.bf16.msra.mxu0 %v596_v33 }
  0x6f   :  { %559 = vmatprep.subr.bf16.mxu0 %v716_v0 }
  0x72   :  { %560 = vmatpush3.bf16.msra.mxu0 %v597_v34 }
 0x115   :  { %v188_v26 = vpop.f32.mrf.mxu0 }
 0x116   :  { %v189_v27 = vadd.f32 %v451_v25, %v188_v26 }
 0x117   :  { %v523_v28 = vpop.f32.mrf.mxu0 }
 0x118   :  { %v194_v29 = vmax.f32 %v189_v27, 0.0 }
 0x119   :  { %v191_v30 = vpop.f32.mrf.mxu0 }
 0x11a   :  { %v195_v31 = vpack.c.bf16 %v194_v29, %v194_v29 }
 0x11b   :  { %v524_v32 = vpop.f32.mrf.mxu0 }
 0x11c   :  { %542 = vmatmul.mubr.bf16.vlgmr.msra.gmra.mxu1 %v195_v31 }
 0x1dc   :  { %v301_v36 = vpop.f32.mrf.mxu1 }
 0x1dd   :  { %v302_v37 = vadd.f32 %v460_v35, %v301_v36 }
 0x1de   :  { %v543_v38 = vpop.f32.mrf.mxu1 }
 0x1df   :  { %v307_v39 = vmax.f32 %v302_v37, 0.0 }
 0x1e0   :  { %v304_v40 = vpop.f32.mrf.mxu1 }
 0x1e1   :  { %v308_v41 = vpack.c.bf16 %v307_v39, %v307_v39 }
 0x1e2   :  { %v544_v42 = vpop.f32.mrf.mxu1 }
 0x1e3   :  { %562 = vmatmul.mubr.bf16.vlgmr.msra.gmra.mxu0 %v308_v41 }
 0x2a3   :  { %v414_v46 = vpop.f32.mrf.mxu0 }
 0x2a4   :  { %v415_v47 = vadd.f32 %v469_v45, %v414_v46 }
 0x2a5   :  { %v563_v48 = vpop.f32.mrf.mxu0 }
 0x2a6   :  { %v423_v49 = vsel %vm422_vm1, %v415_v47, -1e+30 }
 0x2a7   :  { %424 = vmax.xlane.f32.xlu0 %v423_v49  ;;  %v417_v50 = vpop.f32.mrf.mxu0 }
 0x2a9   :  { %v564_v51 = vpop.f32.mrf.mxu0 }
 0x330   :  { %v425_v52 = vpop.xlane.xlu0 %424 }
 0x331   :  { %v426_v53 = vsub.f32 %v423_v49, %v425_v52 }
 0x333   :  { %v427_v54 = vmul.f32 1.442695, %v426_v53 }
 0x335   :  { %598 = vpow2.f32 %v427_v54 }
 0x342   :  { %v599_v55 = vpop.eup %598 }
 0x343   :  { %429 = vadd.xlane.f32.xlu0 %v599_v55 }
 0x3cc   :  { %v430_v56 = vpop.xlane.xlu0 %429 }
 0x3cd   :  { %600 = vrcp.f32 %v430_v56 }
 0x3da   :  { %v601_v57 = vpop.eup %600 }
 0x3db   :  { %v432_v58 = vmul.f32 %v601_v57, %v599_v55 }
 0x3dd   :  { %433 = vst [vmem:[#allocation10] sm:$0xff] %v432_v58 }
 0x3de   :  { %693 = shalt.err (!%p690_p10)
}
 0x3df   :  { %443 = dma.vmem_to_hbm [thread:$0]  %s441_s24, 128, %s829_s7, [#allocation4]  }
 0x3e0   :  { %708 = dma.done.wait [#allocation4], 128  }
 0x3e1   :  { %709 = vsyncadd [#allocation4], 4294967168 }
 0x3e2   :  { %447 = vsyncpa [#allocation3], 1 }
 0x3e3   :  { %448 = vsyncpa [#allocation6], 1 }
 0x3e4   :  { %449 = vsyncpa [#allocation9], 1 }
 0x3e5   :  { %450 = vsyncpa [#allocation4], 1 }

</bundles_post_ra>
